<compile_context>
chip_gen: v5e
topology: v5e:2x2
jax: 0.10.0
libtpu: 0.0.40
codegen_flags: <defaults>
</compile_context>

<pallas_src>
import math
import jax
import jax.numpy as jnp
from jax.experimental import pallas as pl
from jax.experimental.pallas import tpu as pltpu


# ----------------------------- Pallas kernel ------------------------------ #
def _gnn_kernel(src_ref, dst_ref, feat_ref,
                lw1_ref, w1_ref, mb1_ref, hb1_ref,
                lw2_ref, w2_ref, mb2_ref, hb2_ref,
                out_ref):
    """Fused 2-layer GNN forward. All operands resident in VMEM (small graph).

    src_ref : (E, 1)  int32   edge source-node ids
    dst_ref : (1, E)  int32   edge destination-node ids
    feat_ref: (N, in) f32     node features
    lw*_ref : (in, N, out)    self-loop weights (pre-transposed, contraction first)
    w*_ref  : (in, E, out)    per-edge weights  (pre-transposed, contraction first)
    mb*_ref : (E, out)        message bias
    hb*_ref : (N, out)        node bias
    out_ref : (N, out_pad)    lane-dense padded output
    """
    n_nodes = feat_ref.shape[0]
    n_edges = src_ref.shape[0]
    out_feat = lw2_ref.shape[2]

    # Build both one-hot incidence matrices once, on-chip, from O(E) indices.
    edge_node = jax.lax.broadcasted_iota(jnp.int32, (n_edges, n_nodes), 1)
    gather_oh = (edge_node == src_ref[...]).astype(jnp.float32)       # (E, N)
    node_edge = jax.lax.broadcasted_iota(jnp.int32, (n_nodes, n_edges), 0)
    scatter_oh = (node_edge == dst_ref[...]).astype(jnp.float32)      # (N, E)

    def layer(h, lw_ref, w_ref, mb_ref, hb_ref):
        n_in = h.shape[1]
        # 1) gather source-node features on the MXU: hs[e,:] = h[src[e],:]
        hs = jnp.dot(gather_oh, h,
                     preferred_element_type=jnp.float32,
                     precision=jax.lax.Precision.HIGHEST)             # (E, n_in)
        # 2) self-loop term: per-node (1,in)@(in,out), unrolled over the tiny
        #    static in_feat on the VPU.
        loop = h[:, 0:1] * lw_ref[0]
        for i in range(1, n_in):
            loop = loop + h[:, i:i + 1] * lw_ref[i]
        # 3) per-edge message: (1,in)@(in,out) + bias, unrolled on the VPU.
        m = hs[:, 0:1] * w_ref[0] + mb_ref[...]
        for i in range(1, n_in):
            m = m + hs[:, i:i + 1] * w_ref[i]
        # 4) segment-sum over destination nodes on the MXU (replaces the
        #    serial scatter-add RMW loop; duplicate destinations accumulate).
        agg = jnp.dot(scatter_oh, m,
                      preferred_element_type=jnp.float32,
                      precision=jax.lax.Precision.HIGHEST)            # (N, out)
        return agg + hb_ref[...] + loop

    h1 = jnp.tanh(layer(feat_ref[...], lw1_ref, w1_ref, mb1_ref, hb1_ref))
    h2 = layer(h1, lw2_ref, w2_ref, mb2_ref, hb2_ref)                 # (N, out_feat)

    # Lane-dense padded HBM store: weights stayed unpadded; only the output
    # tile is 128-lane.  One full zero store + one masked sub-store at lane 0.
    if out_feat == out_ref.shape[1]:
        out_ref[...] = h2
    else:
        out_ref[...] = jnp.zeros_like(out_ref)
        out_ref[:, :out_feat] = h2


# ------------------------------- wrappers ---------------------------------- #
def prepare_params(params):
    """One-time parameter prep, hoisted out of the per-call forward path:
    pre-transpose batched weights so the contraction axis leads and every
    in-kernel W_T[i] slice is a contiguous (N,out)/(E,out) slab."""
    lw1, w1, mb1, hb1, lw2, w2, mb2, hb2 = params
    return (jnp.transpose(lw1, (1, 0, 2)),   # (in_feat, N, hidden)
            jnp.transpose(w1, (1, 0, 2)),    # (in_feat, E, hidden)
            mb1, hb1,
            jnp.transpose(lw2, (1, 0, 2)),   # (hidden,  N, out)
            jnp.transpose(w2, (1, 0, 2)),    # (hidden,  E, out)
            mb2, hb2)


def gnn_forward(feat, src, dst, prepared_params):
    (lw1_t, w1_t, mb1, hb1, lw2_t, w2_t, mb2, hb2) = prepared_params
    n_nodes = feat.shape[0]
    n_edges = int(src.shape[0])
    out_feat = lw2_t.shape[-1]

    # Index vectors shaped so the kernel can broadcast them against iotas.
    src_col = src.astype(jnp.int32).reshape(n_edges, 1)   # (E, 1)
    dst_row = dst.astype(jnp.int32).reshape(1, n_edges)   # (1, E)

    # Only the final HBM store is lane-padded; weights/biases stay unpadded.
    out_pad = -(-out_feat // 128) * 128

    vmem = pl.BlockSpec(memory_space=pltpu.MemorySpace.VMEM)

    out_padded = pl.pallas_call(
        _gnn_kernel,
        out_shape=jax.ShapeDtypeStruct((n_nodes, out_pad), jnp.float32),
        in_specs=[vmem] * 11,
        out_specs=vmem,
        # TODO(synk): at real graph sizes add a grid: node-tile axis "parallel"
        # (2 TCs on v7x) and an edge-tile reduction axis "arbitrary" with a
        # VMEM accumulator + the same one-hot segment-sum per edge tile
        # (race-free, unlike RMW).  Size edge tiles per generation with
        # unpadded weights (~bytes/edge): v7x ~4k-8k edges/tile (64 MiB VMEM,
        # raise vmem_limit_bytes above the 32 MiB default), v6e 2-4x larger
        # (128 MiB), v5e ~2x smaller than v6e (16 MiB default scoped VMEM).
    )(src_col, dst_row, feat, lw1_t, w1_t, mb1, hb1, lw2_t, w2_t, mb2, hb2)

    return out_padded[:, :out_feat]


# --------------------------- parameter creation ---------------------------- #
def xavier_uniform(key, shape, gain):
    # mimics torch.nn.init.xavier_uniform_ fan computation for a 3D tensor
    fan_out = shape[0] * math.prod(shape[2:])
    fan_in = shape[1] * math.prod(shape[2:])
    bound = gain * math.sqrt(6.0 / (fan_in + fan_out))
    return jax.random.uniform(key, shape, jnp.float32, -bound, bound)


def make_layer_params(key, n_nodes, n_edges, in_feat, out_feat):
    k1, k2 = jax.random.split(key)
    gain_tanh = 5.0 / 3.0
    loop_w = xavier_uniform(k1, (n_nodes, in_feat, out_feat), gain_tanh)
    bound = 1.0 / math.sqrt(in_feat)
    W = jax.random.uniform(k2, (n_edges, in_feat, out_feat), jnp.float32, -bound, bound)
    m_bias = jnp.zeros((n_edges, out_feat), jnp.float32)   # module: (E,1,out) -> squeezed
    h_bias = jnp.zeros((n_nodes, out_feat), jnp.float32)   # module: (N,1,out) -> squeezed
    return loop_w, W, m_bias, h_bias


# --------------------------------- main ------------------------------------ #
if __name__ == "__main__":
    # small deterministic graph
    src = jnp.array([0, 1, 2, 3, 4, 5, 6, 7, 0, 2, 4, 6], dtype=jnp.int32)
    dst = jnp.array([1, 2, 3, 4, 5, 6, 7, 0, 4, 6, 0, 2], dtype=jnp.int32)
    n_nodes, n_edges = 8, int(src.shape[0])

    in_feat, hidden, out_feat = 4, 8, 6   # hidden=8 is fixed by the module

    key = jax.random.PRNGKey(0)
    k_feat, k_l1, k_l2 = jax.random.split(key, 3)

    feat = jax.random.normal(k_feat, (n_nodes, in_feat), jnp.float32)

    lw1, w1, mb1, hb1 = make_layer_params(k_l1, n_nodes, n_edges, in_feat, hidden)
    lw2, w2, mb2, hb2 = make_layer_params(k_l2, n_nodes, n_edges, hidden, out_feat)
    params = (lw1, w1, mb1, hb1, lw2, w2, mb2, hb2)

    prepared = prepare_params(params)   # one-time prep, not in the hot path

    out = gnn_forward(feat, src, dst, prepared)
    out = jax.block_until_ready(out)

    # pure-JAX reference check (same math, no Pallas)
    def ref_layer(h, lw, w, mb, hb):
        loop = jnp.einsum("ni,nio->no", h, lw, precision=jax.lax.Precision.HIGHEST)
        m = jnp.einsum("ei,eio->eo", h[src], w, precision=jax.lax.Precision.HIGHEST) + mb
        agg = jnp.zeros((n_nodes, m.shape[-1]), jnp.float32).at[dst].add(m)
        return agg + hb + loop

    ref = ref_layer(jnp.tanh(ref_layer(feat, lw1, w1, mb1, hb1)), lw2, w2, mb2, hb2)
    assert out.shape == (n_nodes, out_feat)
    assert jnp.allclose(out, ref, atol=1e-4, rtol=1e-4)

    print("KERNEL_OK")
</pallas_src>

<mosaic_0001>
module attributes {stable_mosaic.version = 11 : i64} {
  func.func @_gnn_kernel(%arg0: memref<12x1xi32, #tpu.memory_space<vmem>>, %arg1: memref<1x12xi32, #tpu.memory_space<vmem>>, %arg2: memref<8x4xf32, #tpu.memory_space<vmem>>, %arg3: memref<4x8x8xf32, #tpu.memory_space<vmem>>, %arg4: memref<4x12x8xf32, #tpu.memory_space<vmem>>, %arg5: memref<12x8xf32, #tpu.memory_space<vmem>>, %arg6: memref<8x8xf32, #tpu.memory_space<vmem>>, %arg7: memref<8x8x6xf32, #tpu.memory_space<vmem>>, %arg8: memref<8x12x6xf32, #tpu.memory_space<vmem>>, %arg9: memref<12x6xf32, #tpu.memory_space<vmem>>, %arg10: memref<8x6xf32, #tpu.memory_space<vmem>>, %arg11: memref<8x128xf32, #tpu.memory_space<vmem>>) attributes {dimension_semantics = [], scalar_prefetch = 0 : i64, scratch_operands = 0 : i64, tpu.core_type = #tpu.core_type<tc>} {
    %0 = tpu.iota {dimensions = array<i32: 1>} : vector<12x8xi32>
    %c0 = arith.constant 0 : index
    %c0_0 = arith.constant 0 : index
    %1 = vector.load %arg0[%c0, %c0_0] : memref<12x1xi32, #tpu.memory_space<vmem>>, vector<12x1xi32>
    %2 = vector.broadcast %1 : vector<12x1xi32> to vector<12x8xi32>
    %3 = arith.cmpi eq, %0, %2 : vector<12x8xi32>
    %4 = arith.extui %3 : vector<12x8xi1> to vector<12x8xi32>
    %5 = arith.sitofp %4 : vector<12x8xi32> to vector<12x8xf32>
    %6 = tpu.iota {dimensions = array<i32: 0>} : vector<8x12xi32>
    %c0_1 = arith.constant 0 : index
    %c0_2 = arith.constant 0 : index
    %7 = vector.load %arg1[%c0_1, %c0_2] : memref<1x12xi32, #tpu.memory_space<vmem>>, vector<1x12xi32>
    %8 = vector.broadcast %7 : vector<1x12xi32> to vector<8x12xi32>
    %9 = arith.cmpi eq, %6, %8 : vector<8x12xi32>
    %10 = arith.extui %9 : vector<8x12xi1> to vector<8x12xi32>
    %11 = arith.sitofp %10 : vector<8x12xi32> to vector<8x12xf32>
    %c0_3 = arith.constant 0 : index
    %c0_4 = arith.constant 0 : index
    %12 = vector.load %arg2[%c0_3, %c0_4] : memref<8x4xf32, #tpu.memory_space<vmem>>, vector<8x4xf32>
    %cst = arith.constant dense<0.000000e+00> : vector<12x4xf32>
    %13 = tpu.matmul %5, %12, %cst {dimension_numbers = #tpu.dot_dimension_numbers<[1], [0], [0], [1], [0, 0, 1, 1], [], []>, precision = #tpu.contract_precision<fp32>} : vector<12x8xf32>, vector<8x4xf32>, vector<12x4xf32> -> vector<12x4xf32>
    %14 = vector.extract_strided_slice %12 {offsets = [0, 0], sizes = [8, 1], strides = [1, 1]} : vector<8x4xf32> to vector<8x1xf32>
    %c0_5 = arith.constant 0 : index
    %c0_6 = arith.constant 0 : index
    %c0_7 = arith.constant 0 : index
    %15 = vector.load %arg3[%c0_5, %c0_6, %c0_7] : memref<4x8x8xf32, #tpu.memory_space<vmem>>, vector<1x8x8xf32>
    %16 = vector.shape_cast %15 : vector<1x8x8xf32> to vector<8x8xf32>
    %17 = vector.broadcast %14 : vector<8x1xf32> to vector<8x8xf32>
    %18 = arith.mulf %17, %16 : vector<8x8xf32>
    %19 = vector.extract_strided_slice %12 {offsets = [0, 1], sizes = [8, 1], strides = [1, 1]} : vector<8x4xf32> to vector<8x1xf32>
    %c1 = arith.constant 1 : index
    %c0_8 = arith.constant 0 : index
    %c0_9 = arith.constant 0 : index
    %20 = vector.load %arg3[%c1, %c0_8, %c0_9] : memref<4x8x8xf32, #tpu.memory_space<vmem>>, vector<1x8x8xf32>
    %21 = vector.shape_cast %20 : vector<1x8x8xf32> to vector<8x8xf32>
    %22 = vector.broadcast %19 : vector<8x1xf32> to vector<8x8xf32>
    %23 = arith.mulf %22, %21 : vector<8x8xf32>
    %24 = arith.addf %18, %23 : vector<8x8xf32>
    %25 = vector.extract_strided_slice %12 {offsets = [0, 2], sizes = [8, 1], strides = [1, 1]} : vector<8x4xf32> to vector<8x1xf32>
    %c2 = arith.constant 2 : index
    %c0_10 = arith.constant 0 : index
    %c0_11 = arith.constant 0 : index
    %26 = vector.load %arg3[%c2, %c0_10, %c0_11] : memref<4x8x8xf32, #tpu.memory_space<vmem>>, vector<1x8x8xf32>
    %27 = vector.shape_cast %26 : vector<1x8x8xf32> to vector<8x8xf32>
    %28 = vector.broadcast %25 : vector<8x1xf32> to vector<8x8xf32>
    %29 = arith.mulf %28, %27 : vector<8x8xf32>
    %30 = arith.addf %24, %29 : vector<8x8xf32>
    %31 = vector.extract_strided_slice %12 {offsets = [0, 3], sizes = [8, 1], strides = [1, 1]} : vector<8x4xf32> to vector<8x1xf32>
    %c3 = arith.constant 3 : index
    %c0_12 = arith.constant 0 : index
    %c0_13 = arith.constant 0 : index
    %32 = vector.load %arg3[%c3, %c0_12, %c0_13] : memref<4x8x8xf32, #tpu.memory_space<vmem>>, vector<1x8x8xf32>
    %33 = vector.shape_cast %32 : vector<1x8x8xf32> to vector<8x8xf32>
    %34 = vector.broadcast %31 : vector<8x1xf32> to vector<8x8xf32>
    %35 = arith.mulf %34, %33 : vector<8x8xf32>
    %36 = arith.addf %30, %35 : vector<8x8xf32>
    %37 = vector.extract_strided_slice %13 {offsets = [0, 0], sizes = [12, 1], strides = [1, 1]} : vector<12x4xf32> to vector<12x1xf32>
    %c0_14 = arith.constant 0 : index
    %c0_15 = arith.constant 0 : index
    %c0_16 = arith.constant 0 : index
    %38 = vector.load %arg4[%c0_14, %c0_15, %c0_16] : memref<4x12x8xf32, #tpu.memory_space<vmem>>, vector<1x12x8xf32>
    %39 = vector.shape_cast %38 : vector<1x12x8xf32> to vector<12x8xf32>
    %40 = vector.broadcast %37 : vector<12x1xf32> to vector<12x8xf32>
    %41 = arith.mulf %40, %39 : vector<12x8xf32>
    %c0_17 = arith.constant 0 : index
    %c0_18 = arith.constant 0 : index
    %42 = vector.load %arg5[%c0_17, %c0_18] : memref<12x8xf32, #tpu.memory_space<vmem>>, vector<12x8xf32>
    %43 = arith.addf %41, %42 : vector<12x8xf32>
    %44 = vector.extract_strided_slice %13 {offsets = [0, 1], sizes = [12, 1], strides = [1, 1]} : vector<12x4xf32> to vector<12x1xf32>
    %c1_19 = arith.constant 1 : index
    %c0_20 = arith.constant 0 : index
    %c0_21 = arith.constant 0 : index
    %45 = vector.load %arg4[%c1_19, %c0_20, %c0_21] : memref<4x12x8xf32, #tpu.memory_space<vmem>>, vector<1x12x8xf32>
    %46 = vector.shape_cast %45 : vector<1x12x8xf32> to vector<12x8xf32>
    %47 = vector.broadcast %44 : vector<12x1xf32> to vector<12x8xf32>
    %48 = arith.mulf %47, %46 : vector<12x8xf32>
    %49 = arith.addf %43, %48 : vector<12x8xf32>
    %50 = vector.extract_strided_slice %13 {offsets = [0, 2], sizes = [12, 1], strides = [1, 1]} : vector<12x4xf32> to vector<12x1xf32>
    %c2_22 = arith.constant 2 : index
    %c0_23 = arith.constant 0 : index
    %c0_24 = arith.constant 0 : index
    %51 = vector.load %arg4[%c2_22, %c0_23, %c0_24] : memref<4x12x8xf32, #tpu.memory_space<vmem>>, vector<1x12x8xf32>
    %52 = vector.shape_cast %51 : vector<1x12x8xf32> to vector<12x8xf32>
    %53 = vector.broadcast %50 : vector<12x1xf32> to vector<12x8xf32>
    %54 = arith.mulf %53, %52 : vector<12x8xf32>
    %55 = arith.addf %49, %54 : vector<12x8xf32>
    %56 = vector.extract_strided_slice %13 {offsets = [0, 3], sizes = [12, 1], strides = [1, 1]} : vector<12x4xf32> to vector<12x1xf32>
    %c3_25 = arith.constant 3 : index
    %c0_26 = arith.constant 0 : index
    %c0_27 = arith.constant 0 : index
    %57 = vector.load %arg4[%c3_25, %c0_26, %c0_27] : memref<4x12x8xf32, #tpu.memory_space<vmem>>, vector<1x12x8xf32>
    %58 = vector.shape_cast %57 : vector<1x12x8xf32> to vector<12x8xf32>
    %59 = vector.broadcast %56 : vector<12x1xf32> to vector<12x8xf32>
    %60 = arith.mulf %59, %58 : vector<12x8xf32>
    %61 = arith.addf %55, %60 : vector<12x8xf32>
    %cst_28 = arith.constant dense<0.000000e+00> : vector<8x8xf32>
    %62 = tpu.matmul %11, %61, %cst_28 {dimension_numbers = #tpu.dot_dimension_numbers<[1], [0], [0], [1], [0, 0, 1, 1], [], []>, precision = #tpu.contract_precision<fp32>} : vector<8x12xf32>, vector<12x8xf32>, vector<8x8xf32> -> vector<8x8xf32>
    %c0_29 = arith.constant 0 : index
    %c0_30 = arith.constant 0 : index
    %63 = vector.load %arg6[%c0_29, %c0_30] : memref<8x8xf32, #tpu.memory_space<vmem>>, vector<8x8xf32>
    %64 = arith.addf %62, %63 : vector<8x8xf32>
    %65 = arith.addf %64, %36 : vector<8x8xf32>
    %66 = math.tanh %65 : vector<8x8xf32>
    %cst_31 = arith.constant dense<0.000000e+00> : vector<12x8xf32>
    %67 = tpu.matmul %5, %66, %cst_31 {dimension_numbers = #tpu.dot_dimension_numbers<[1], [0], [0], [1], [0, 0, 1, 1], [], []>, precision = #tpu.contract_precision<fp32>} : vector<12x8xf32>, vector<8x8xf32>, vector<12x8xf32> -> vector<12x8xf32>
    %68 = vector.extract_strided_slice %66 {offsets = [0, 0], sizes = [8, 1], strides = [1, 1]} : vector<8x8xf32> to vector<8x1xf32>
    %c0_32 = arith.constant 0 : index
    %c0_33 = arith.constant 0 : index
    %c0_34 = arith.constant 0 : index
    %69 = vector.load %arg7[%c0_32, %c0_33, %c0_34] : memref<8x8x6xf32, #tpu.memory_space<vmem>>, vector<1x8x6xf32>
    %70 = vector.shape_cast %69 : vector<1x8x6xf32> to vector<8x6xf32>
    %71 = vector.broadcast %68 : vector<8x1xf32> to vector<8x6xf32>
    %72 = arith.mulf %71, %70 : vector<8x6xf32>
    %73 = vector.extract_strided_slice %66 {offsets = [0, 1], sizes = [8, 1], strides = [1, 1]} : vector<8x8xf32> to vector<8x1xf32>
    %c1_35 = arith.constant 1 : index
    %c0_36 = arith.constant 0 : index
    %c0_37 = arith.constant 0 : index
    %74 = vector.load %arg7[%c1_35, %c0_36, %c0_37] : memref<8x8x6xf32, #tpu.memory_space<vmem>>, vector<1x8x6xf32>
    %75 = vector.shape_cast %74 : vector<1x8x6xf32> to vector<8x6xf32>
    %76 = vector.broadcast %73 : vector<8x1xf32> to vector<8x6xf32>
    %77 = arith.mulf %76, %75 : vector<8x6xf32>
    %78 = arith.addf %72, %77 : vector<8x6xf32>
    %79 = vector.extract_strided_slice %66 {offsets = [0, 2], sizes = [8, 1], strides = [1, 1]} : vector<8x8xf32> to vector<8x1xf32>
    %c2_38 = arith.constant 2 : index
    %c0_39 = arith.constant 0 : index
    %c0_40 = arith.constant 0 : index
    %80 = vector.load %arg7[%c2_38, %c0_39, %c0_40] : memref<8x8x6xf32, #tpu.memory_space<vmem>>, vector<1x8x6xf32>
    %81 = vector.shape_cast %80 : vector<1x8x6xf32> to vector<8x6xf32>
    %82 = vector.broadcast %79 : vector<8x1xf32> to vector<8x6xf32>
    %83 = arith.mulf %82, %81 : vector<8x6xf32>
    %84 = arith.addf %78, %83 : vector<8x6xf32>
    %85 = vector.extract_strided_slice %66 {offsets = [0, 3], sizes = [8, 1], strides = [1, 1]} : vector<8x8xf32> to vector<8x1xf32>
    %c3_41 = arith.constant 3 : index
    %c0_42 = arith.constant 0 : index
    %c0_43 = arith.constant 0 : index
    %86 = vector.load %arg7[%c3_41, %c0_42, %c0_43] : memref<8x8x6xf32, #tpu.memory_space<vmem>>, vector<1x8x6xf32>
    %87 = vector.shape_cast %86 : vector<1x8x6xf32> to vector<8x6xf32>
    %88 = vector.broadcast %85 : vector<8x1xf32> to vector<8x6xf32>
    %89 = arith.mulf %88, %87 : vector<8x6xf32>
    %90 = arith.addf %84, %89 : vector<8x6xf32>
    %91 = vector.extract_strided_slice %66 {offsets = [0, 4], sizes = [8, 1], strides = [1, 1]} : vector<8x8xf32> to vector<8x1xf32>
    %c4 = arith.constant 4 : index
    %c0_44 = arith.constant 0 : index
    %c0_45 = arith.constant 0 : index
    %92 = vector.load %arg7[%c4, %c0_44, %c0_45] : memref<8x8x6xf32, #tpu.memory_space<vmem>>, vector<1x8x6xf32>
    %93 = vector.shape_cast %92 : vector<1x8x6xf32> to vector<8x6xf32>
    %94 = vector.broadcast %91 : vector<8x1xf32> to vector<8x6xf32>
    %95 = arith.mulf %94, %93 : vector<8x6xf32>
    %96 = arith.addf %90, %95 : vector<8x6xf32>
    %97 = vector.extract_strided_slice %66 {offsets = [0, 5], sizes = [8, 1], strides = [1, 1]} : vector<8x8xf32> to vector<8x1xf32>
    %c5 = arith.constant 5 : index
    %c0_46 = arith.constant 0 : index
    %c0_47 = arith.constant 0 : index
    %98 = vector.load %arg7[%c5, %c0_46, %c0_47] : memref<8x8x6xf32, #tpu.memory_space<vmem>>, vector<1x8x6xf32>
    %99 = vector.shape_cast %98 : vector<1x8x6xf32> to vector<8x6xf32>
    %100 = vector.broadcast %97 : vector<8x1xf32> to vector<8x6xf32>
    %101 = arith.mulf %100, %99 : vector<8x6xf32>
    %102 = arith.addf %96, %101 : vector<8x6xf32>
    %103 = vector.extract_strided_slice %66 {offsets = [0, 6], sizes = [8, 1], strides = [1, 1]} : vector<8x8xf32> to vector<8x1xf32>
    %c6 = arith.constant 6 : index
    %c0_48 = arith.constant 0 : index
    %c0_49 = arith.constant 0 : index
    %104 = vector.load %arg7[%c6, %c0_48, %c0_49] : memref<8x8x6xf32, #tpu.memory_space<vmem>>, vector<1x8x6xf32>
    %105 = vector.shape_cast %104 : vector<1x8x6xf32> to vector<8x6xf32>
    %106 = vector.broadcast %103 : vector<8x1xf32> to vector<8x6xf32>
    %107 = arith.mulf %106, %105 : vector<8x6xf32>
    %108 = arith.addf %102, %107 : vector<8x6xf32>
    %109 = vector.extract_strided_slice %66 {offsets = [0, 7], sizes = [8, 1], strides = [1, 1]} : vector<8x8xf32> to vector<8x1xf32>
    %c7 = arith.constant 7 : index
    %c0_50 = arith.constant 0 : index
    %c0_51 = arith.constant 0 : index
    %110 = vector.load %arg7[%c7, %c0_50, %c0_51] : memref<8x8x6xf32, #tpu.memory_space<vmem>>, vector<1x8x6xf32>
    %111 = vector.shape_cast %110 : vector<1x8x6xf32> to vector<8x6xf32>
    %112 = vector.broadcast %109 : vector<8x1xf32> to vector<8x6xf32>
    %113 = arith.mulf %112, %111 : vector<8x6xf32>
    %114 = arith.addf %108, %113 : vector<8x6xf32>
    %115 = vector.extract_strided_slice %67 {offsets = [0, 0], sizes = [12, 1], strides = [1, 1]} : vector<12x8xf32> to vector<12x1xf32>
    %c0_52 = arith.constant 0 : index
    %c0_53 = arith.constant 0 : index
    %c0_54 = arith.constant 0 : index
    %116 = vector.load %arg8[%c0_52, %c0_53, %c0_54] : memref<8x12x6xf32, #tpu.memory_space<vmem>>, vector<1x12x6xf32>
    %117 = vector.shape_cast %116 : vector<1x12x6xf32> to vector<12x6xf32>
    %118 = vector.broadcast %115 : vector<12x1xf32> to vector<12x6xf32>
    %119 = arith.mulf %118, %117 : vector<12x6xf32>
    %c0_55 = arith.constant 0 : index
    %c0_56 = arith.constant 0 : index
    %120 = vector.load %arg9[%c0_55, %c0_56] : memref<12x6xf32, #tpu.memory_space<vmem>>, vector<12x6xf32>
    %121 = arith.addf %119, %120 : vector<12x6xf32>
    %122 = vector.extract_strided_slice %67 {offsets = [0, 1], sizes = [12, 1], strides = [1, 1]} : vector<12x8xf32> to vector<12x1xf32>
    %c1_57 = arith.constant 1 : index
    %c0_58 = arith.constant 0 : index
    %c0_59 = arith.constant 0 : index
    %123 = vector.load %arg8[%c1_57, %c0_58, %c0_59] : memref<8x12x6xf32, #tpu.memory_space<vmem>>, vector<1x12x6xf32>
    %124 = vector.shape_cast %123 : vector<1x12x6xf32> to vector<12x6xf32>
    %125 = vector.broadcast %122 : vector<12x1xf32> to vector<12x6xf32>
    %126 = arith.mulf %125, %124 : vector<12x6xf32>
    %127 = arith.addf %121, %126 : vector<12x6xf32>
    %128 = vector.extract_strided_slice %67 {offsets = [0, 2], sizes = [12, 1], strides = [1, 1]} : vector<12x8xf32> to vector<12x1xf32>
    %c2_60 = arith.constant 2 : index
    %c0_61 = arith.constant 0 : index
    %c0_62 = arith.constant 0 : index
    %129 = vector.load %arg8[%c2_60, %c0_61, %c0_62] : memref<8x12x6xf32, #tpu.memory_space<vmem>>, vector<1x12x6xf32>
    %130 = vector.shape_cast %129 : vector<1x12x6xf32> to vector<12x6xf32>
    %131 = vector.broadcast %128 : vector<12x1xf32> to vector<12x6xf32>
    %132 = arith.mulf %131, %130 : vector<12x6xf32>
    %133 = arith.addf %127, %132 : vector<12x6xf32>
    %134 = vector.extract_strided_slice %67 {offsets = [0, 3], sizes = [12, 1], strides = [1, 1]} : vector<12x8xf32> to vector<12x1xf32>
    %c3_63 = arith.constant 3 : index
    %c0_64 = arith.constant 0 : index
    %c0_65 = arith.constant 0 : index
    %135 = vector.load %arg8[%c3_63, %c0_64, %c0_65] : memref<8x12x6xf32, #tpu.memory_space<vmem>>, vector<1x12x6xf32>
    %136 = vector.shape_cast %135 : vector<1x12x6xf32> to vector<12x6xf32>
    %137 = vector.broadcast %134 : vector<12x1xf32> to vector<12x6xf32>
    %138 = arith.mulf %137, %136 : vector<12x6xf32>
    %139 = arith.addf %133, %138 : vector<12x6xf32>
    %140 = vector.extract_strided_slice %67 {offsets = [0, 4], sizes = [12, 1], strides = [1, 1]} : vector<12x8xf32> to vector<12x1xf32>
    %c4_66 = arith.constant 4 : index
    %c0_67 = arith.constant 0 : index
    %c0_68 = arith.constant 0 : index
    %141 = vector.load %arg8[%c4_66, %c0_67, %c0_68] : memref<8x12x6xf32, #tpu.memory_space<vmem>>, vector<1x12x6xf32>
    %142 = vector.shape_cast %141 : vector<1x12x6xf32> to vector<12x6xf32>
    %143 = vector.broadcast %140 : vector<12x1xf32> to vector<12x6xf32>
    %144 = arith.mulf %143, %142 : vector<12x6xf32>
    %145 = arith.addf %139, %144 : vector<12x6xf32>
    %146 = vector.extract_strided_slice %67 {offsets = [0, 5], sizes = [12, 1], strides = [1, 1]} : vector<12x8xf32> to vector<12x1xf32>
    %c5_69 = arith.constant 5 : index
    %c0_70 = arith.constant 0 : index
    %c0_71 = arith.constant 0 : index
    %147 = vector.load %arg8[%c5_69, %c0_70, %c0_71] : memref<8x12x6xf32, #tpu.memory_space<vmem>>, vector<1x12x6xf32>
    %148 = vector.shape_cast %147 : vector<1x12x6xf32> to vector<12x6xf32>
    %149 = vector.broadcast %146 : vector<12x1xf32> to vector<12x6xf32>
    %150 = arith.mulf %149, %148 : vector<12x6xf32>
    %151 = arith.addf %145, %150 : vector<12x6xf32>
    %152 = vector.extract_strided_slice %67 {offsets = [0, 6], sizes = [12, 1], strides = [1, 1]} : vector<12x8xf32> to vector<12x1xf32>
    %c6_72 = arith.constant 6 : index
    %c0_73 = arith.constant 0 : index
    %c0_74 = arith.constant 0 : index
    %153 = vector.load %arg8[%c6_72, %c0_73, %c0_74] : memref<8x12x6xf32, #tpu.memory_space<vmem>>, vector<1x12x6xf32>
    %154 = vector.shape_cast %153 : vector<1x12x6xf32> to vector<12x6xf32>
    %155 = vector.broadcast %152 : vector<12x1xf32> to vector<12x6xf32>
    %156 = arith.mulf %155, %154 : vector<12x6xf32>
    %157 = arith.addf %151, %156 : vector<12x6xf32>
    %158 = vector.extract_strided_slice %67 {offsets = [0, 7], sizes = [12, 1], strides = [1, 1]} : vector<12x8xf32> to vector<12x1xf32>
    %c7_75 = arith.constant 7 : index
    %c0_76 = arith.constant 0 : index
    %c0_77 = arith.constant 0 : index
    %159 = vector.load %arg8[%c7_75, %c0_76, %c0_77] : memref<8x12x6xf32, #tpu.memory_space<vmem>>, vector<1x12x6xf32>
    %160 = vector.shape_cast %159 : vector<1x12x6xf32> to vector<12x6xf32>
    %161 = vector.broadcast %158 : vector<12x1xf32> to vector<12x6xf32>
    %162 = arith.mulf %161, %160 : vector<12x6xf32>
    %163 = arith.addf %157, %162 : vector<12x6xf32>
    %cst_78 = arith.constant dense<0.000000e+00> : vector<8x6xf32>
    %164 = tpu.matmul %11, %163, %cst_78 {dimension_numbers = #tpu.dot_dimension_numbers<[1], [0], [0], [1], [0, 0, 1, 1], [], []>, precision = #tpu.contract_precision<fp32>} : vector<8x12xf32>, vector<12x6xf32>, vector<8x6xf32> -> vector<8x6xf32>
    %c0_79 = arith.constant 0 : index
    %c0_80 = arith.constant 0 : index
    %165 = vector.load %arg10[%c0_79, %c0_80] : memref<8x6xf32, #tpu.memory_space<vmem>>, vector<8x6xf32>
    %166 = arith.addf %164, %165 : vector<8x6xf32>
    %167 = arith.addf %166, %114 : vector<8x6xf32>
    %cst_81 = arith.constant 0.000000e+00 : f32
    %168 = vector.broadcast %cst_81 : f32 to vector<8x128xf32>
    %c0_82 = arith.constant 0 : index
    %c0_83 = arith.constant 0 : index
    %169 = vector.load %arg11[%c0_82, %c0_83] : memref<8x128xf32, #tpu.memory_space<vmem>>, vector<8x128xf32>
    tpu.vector_store %arg11[%c0_82, %c0_83], %168 {strides = array<i32>} : memref<8x128xf32, #tpu.memory_space<vmem>>, vector<8x128xf32>,
    %c0_84 = arith.constant 0 : index
    %c0_85 = arith.constant 0 : index
    %170 = vector.load %arg11[%c0_84, %c0_85] : memref<8x128xf32, #tpu.memory_space<vmem>>, vector<8x6xf32>
    tpu.vector_store %arg11[%c0_84, %c0_85], %167 {strides = array<i32>} : memref<8x128xf32, #tpu.memory_space<vmem>>, vector<8x6xf32>,
    return
  }
}

</mosaic_0001>

<bundles_post_ra>
// kernel: tpu_custom_call.1
= control target key start
LH: loop header
LB: loop body
LE: loop exit
PB: predicated region body
PF: predicated region fallthrough
CT: control target
= control target key end

     0   :  { %v1181_v1 = vmov 0   ;;  %v1182_v2 = vmov 0.0   ;;  %s1534_s0 = inlined_call_operand.vmem [shape: s32[12,1], index: 0, kind: input, shape index: {}]   ;;  %s1535_s1 = inlined_call_operand.vmem [shape: s32[1,12], index: 1, kind: input, shape index: {}]   ;;  %s1536_s2 = inlined_call_operand.vmem [shape: f32[8,4], index: 2, kind: input, shape index: {}]   ;;  %s1537_s3 = inlined_call_operand.vmem [shape: f32[4,8,8], index: 3, kind: input, shape index: {}]   ;;  %s1538_s4 = inlined_call_operand.vmem [shape: f32[4,12,8], index: 4, kind: input, shape index: {}]   ;;  %s1539_s5 = inlined_call_operand.vmem [shape: f32[12,8], index: 5, kind: input, shape index: {}]   ;;  %s1540_s6 = inlined_call_operand.vmem [shape: f32[8,8], index: 6, kind: input, shape index: {}]   ;;  %s1541_s7 = inlined_call_operand.vmem [shape: f32[8,8,6], index: 7, kind: input, shape index: {}]   ;;  %s1542_s8 = inlined_call_operand.vmem [shape: f32[8,12,6], index: 8, kind: input, shape index: {}]   ;;  %s1543_s9 = inlined_call_operand.vmem [shape: f32[12,6], index: 9, kind: input, shape index: {}]   ;;  %s1544_s10 = inlined_call_operand.vmem [shape: f32[8,6], index: 10, kind: input, shape index: {}]   ;;  %s1545_s11 = inlined_call_operand.hbm [shape: f32[8,128], index: 11, kind: output, shape index: {}]  }
   0x1   :  { %v41_v0 = vld [vmem:[%s1534_s0] sm:$0xff]  ;;  %1118 = vset.pattern.permute.xlu0 %v1181_v1  ;;  %1038 = vst [vmem:[#allocation2] sm:$0xff] %v1182_v2  ;;  %1119 = vset.pattern.permute.xlu2 %v1181_v1 }
   0x2   :  { %44 = vperm.xlu0 %1118, %v41_v0   ;;  %1121 = vset.pattern.permute.xlu1 %v1181_v1 }
   0x3   :  { %16 = vsyncpa [#allocation3], 0  ;;  %v42_v3 = vld [vmem:[%s1534_s0 + $0x8] sm:$0xf]  ;;  %v1264_v4 = vld [vmem:[%s1536_s2] sm:$0xff]  ;;  %v39_v10 = vlaneseq  ;;  %vm63_vm0 = vcmask 64512  }
   0x4   :  { %v85_v5 = vand.u32 4294901760, %v1264_v4  ;;  %v1183_v26 = vmov 1   ;;  %v1184_v49 = vmov 2   ;;  %v1185_v50 = vmov 3   ;;  %v1152_v53 = vld [vmem:[%s1535_s1] ss:$0 sm:$0xff] }
   0x5   :  { %v40_v11 = vand.u32 127, %v39_v10  ;;  %v56_v54 = vshrl.u32 %v39_v10, 7  ;;  %v279_v55 = vld [vmem:[%s1538_s4 + $0x8] sm:$0xf]  ;;  %v1070_v56 = vld [vmem:[%s1538_s4 + $0x18] sm:$0xf] }
   0x6   :  { %v120_v6 = vsub.f32 %v1264_v4, %v85_v5  ;;  %179 = vmatpush.msra.mxu3 %v85_v5  ;;  %86 = vmatpush.msra.mxu0 %v85_v5  ;;  %v293_v59 = vld [vmem:[%s1539_s5 + $0x8] sm:$0xf]  ;;  %vm342_vm4 = vcmask 97280   ;;  %v278_v0 = vld [vmem:[%s1538_s4] sm:$0xff]  ;;  %vm346_vm5 = vcmask 1043456   ;;  %s1048_s1 = sshll.u32 %s1545_s11, 4  ;;  %s1049_s1 = int_to_ptr.hbm [resolvable:$true] %s1048_s1 }
   0x7   :  { %vm59_vm3 = vcmp.eq.s32.totalorder %v56_v54, %v1152_v53  ;;  %v292_v10 = vld [vmem:[%s1539_s5] sm:$0xff]  ;;  %vm1039_vm6 = vcmask 48128  }
   0x8   :  { %v121_v7 = vand.u32 4294901760, %v120_v6  ;;  %151 = vmatpush.msra.mxu2 %v120_v6  ;;  %v1341_v62 = vsel %vm59_vm3, 1.0, %v1182_v2  ;;  %v341_v53 = vld [vmem:[%s1540_s6] sm:$0xff]  ;;  %s1190_s6 = smov [#allocation2]  }
   0x9   :  { %s1046_s27 = sshll.u32 %s1190_s6, 4  ;;  %s1047_s27 = int_to_ptr.vmem [resolvable:$true] %s1046_s27 }
   0xa   :  { %47 = vperm.xlu0 %1118, %v42_v3   ;;  %v122_v8 = vsub.f32 %v120_v6, %v121_v7  ;;  %211 = vmatpush.msrb.mxu0 %v121_v7  ;;  %v1072_v3 = vld [vmem:[%s1538_s4 + $0x28] sm:$0xf]  ;;  %v344_v7 = vsel %vm342_vm4, %v1341_v62, 0 }
   0xc   :  { %v123_v9 = vand.u32 4294901760, %v122_v8 }
   0xe   :  { %124 = vmatpush.msra.mxu1 %v123_v9 }
  0x10   :  { %237 = vmatpush.msrb.mxu1 %v85_v5  ;;  %v1069_v5 = vld [vmem:[%s1538_s4 + $0x10] sm:$0xff] }
  0x12   :  { %1120 = vset.pattern.permute.xlu0 %v1183_v26 }
  0x74   :  { %v45_v12 = vpop.permute.xlu0 %44 }
  0x75   :  { %vm49_vm1 = vcmp.eq.s32.totalorder %v40_v11, %v45_v12 }
  0x76   :  { %v1270_v13 = vsel %vm49_vm1, 1.0, %v1182_v2 }
  0x77   :  { %1060 = vmatmul.msk.f32.vlgmr.msra.gmra.mxu1 %vm63_vm0, %v1270_v13  ;;  %v65_v14 = vsel %vm63_vm0, %v1270_v13, 0 }
  0x78   :  { %v1276_v15 = vsub.f32 %v65_v14, %v65_v14 }
  0x7a   :  { %154 = vmatmul.f32.vlgmr.msra.gmra.mxu2 %v1276_v15  ;;  %v1280_v16 = vand.u32 4294901760, %v1276_v15 }
  0x7c   :  { %v48_v17 = vpop.permute.xlu0 %47  ;;  %183 = vmatmul.f32.vlgmr.msra.gmra.mxu3 %v1280_v16  ;;  %v90_v18 = vsub.f32 %v1276_v15, %v1280_v16 }
  0x7d   :  { %vm50_vm2 = vcmp.eq.s32.totalorder %v40_v11, %v48_v17 }
  0x7e   :  { %v1286_v19 = vsel %vm50_vm2, 1.0, %v1182_v2  ;;  %v1288_v20 = vand.u32 4294901760, %v90_v18  ;;  %v1074_v2 = vld [vmem:[%s1538_s4 + $0x38] sm:$0xf]  ;;  %v1360_v18 = vsub.f32 %v344_v7, %v344_v7 }
  0x7f   :  { %1061 = vmatmul.msk.f32.gmra.mxu1 %vm63_vm0, %v1286_v19  ;;  %v68_v21 = vsel %vm63_vm0, %v1286_v19, 0 }
  0x80   :  { %92 = vmatmul.f32.vlgmr.msra.gmra.mxu0 %v1288_v20  ;;  %v1295_v22 = vsub.f32 %v68_v21, %v68_v21 }
  0x82   :  { %159 = vmatmul.f32.gmra.mxu2 %v1295_v22  ;;  %v1299_v23 = vand.u32 4294901760, %v1295_v22 }
  0x84   :  { %189 = vmatmul.f32.gmra.mxu3 %v1299_v23  ;;  %v98_v24 = vsub.f32 %v1295_v22, %v1299_v23 }
  0x86   :  { %v1304_v25 = vand.u32 4294901760, %v98_v24 }
  0x87   :  { %1064 = vmatmul.msk.f32.vlgmr.msrb.gmra.mxu1 %vm63_vm0, %v1270_v13 }
  0x88   :  { %100 = vmatmul.f32.gmra.mxu0 %v1304_v25 }
  0x8f   :  { %1065 = vmatmul.msk.f32.gmra.mxu1 %vm63_vm0, %v1286_v19 }
  0x90   :  { %1062 = vmatmul.msk.f32.vlgmr.msrb.gmra.mxu0 %vm63_vm0, %v1270_v13 }
  0x98   :  { %1063 = vmatmul.msk.f32.gmra.mxu0 %vm63_vm0, %v1286_v19 }
  0xf4   :  { %v127_v27 = vpop.f32.mrf.mxu1 }
  0xfc   :  { %v131_v29 = vpop.f32.mrf.mxu1 }
  0xfd   :  { %v93_v28 = vpop.f32.mrf.mxu0  ;;  %v155_v31 = vpop.f32.mrf.mxu2 }
  0xfe   :  { %v128_v30 = vadd.f32 %v127_v27, %v93_v28  ;;  %v1071_v27 = vld [vmem:[%s1538_s4 + $0x20] sm:$0xff] }
  0xff   :  { %v184_v34 = vpop.f32.mrf.mxu3 }
 0x100   :  { %v156_v33 = vadd.f32 %v155_v31, %v128_v30  ;;  %v1367_v31 = vand.u32 4294901760, %v1360_v18 }
 0x102   :  { %v185_v35 = vadd.f32 %v184_v34, %v156_v33  ;;  %v1073_v33 = vld [vmem:[%s1538_s4 + $0x30] sm:$0xff] }
 0x104   :  { %v240_v37 = vpop.f32.mrf.mxu1 }
 0x105   :  { %v101_v32 = vpop.f32.mrf.mxu0  ;;  %v160_v40 = vpop.f32.mrf.mxu2 }
 0x106   :  { %v132_v36 = vadd.f32 %v131_v29, %v101_v32 }
 0x107   :  { %v190_v43 = vpop.f32.mrf.mxu3 }
 0x108   :  { %v161_v41 = vadd.f32 %v160_v40, %v132_v36 }
 0x10a   :  { %v191_v44 = vadd.f32 %v190_v43, %v161_v41 }
 0x10c   :  { %v244_v47 = vpop.f32.mrf.mxu1 }
 0x10d   :  { %v214_v38 = vpop.f32.mrf.mxu0 }
 0x10e   :  { %v215_v39 = vadd.f32 %v214_v38, %v185_v35 }
 0x110   :  { %v241_v42 = vadd.f32 %v240_v37, %v215_v39  ;;  %v371_v39 = vsub.f32 %v1360_v18, %v1367_v31 }
 0x112   :  { %300 = vperm.xlu0 %1120, %v241_v42   ;;  %282 = vperm.xlu2 %1119, %v241_v42  }
 0x115   :  { %v218_v45 = vpop.f32.mrf.mxu0 }
 0x116   :  { %v219_v46 = vadd.f32 %v218_v45, %v191_v44  ;;  %v1374_v44 = vand.u32 4294901760, %v371_v39 }
 0x118   :  { %v245_v48 = vadd.f32 %v244_v47, %v219_v46 }
 0x11a   :  { %1123 = vset.pattern.permute.xlu2 %v1184_v49  ;;  %287 = vperm.xlu1 %1121, %v245_v48  }
 0x11b   :  { %319 = vperm.xlu2 %1123, %v245_v48   ;;  %257 = vperm.xlu0 %1120, %v1264_v4  }
 0x122   :  { %1122 = vset.pattern.permute.xlu1 %v1183_v26 }
 0x123   :  { %315 = vperm.xlu2 %1123, %v241_v42   ;;  %304 = vperm.xlu1 %1122, %v245_v48  }
 0x12b   :  { %1124 = vset.pattern.permute.xlu1 %v1185_v50  ;;  %1125 = vset.pattern.permute.xlu2 %v1181_v1 }
 0x12c   :  { %334 = vperm.xlu1 %1124, %v245_v48   ;;  %250 = vperm.xlu2 %1125, %v1264_v4  }
 0x134   :  { %330 = vperm.xlu1 %1124, %v241_v42   ;;  %1127 = vset.pattern.permute.xlu2 %v1185_v50 }
 0x135   :  { %273 = vperm.xlu2 %1127, %v1264_v4  }
 0x13c   :  { %1126 = vset.pattern.permute.xlu1 %v1184_v49 }
 0x13d   :  { %265 = vperm.xlu1 %1126, %v1264_v4   ;;  %1128 = vset.pattern.permute.xlu2 %v1181_v1 }
 0x16c   :  { %v283_v52 = vpop.permute.xlu2 %282 }
 0x16d   :  { %v290_v8 = vmul.f32 %v283_v52, %v278_v0 }
 0x16f   :  { %v294_v21 = vadd.f32 %v292_v10, %v290_v8 }
 0x175   :  { %v320_v61 = vpop.permute.xlu2 %319 }
 0x176   :  { %v323_v9 = vmul.f32 %v1072_v3, %v320_v61 }
 0x17d   :  { %v316_v28 = vpop.permute.xlu2 %315 }
 0x17e   :  { %v322_v34 = vmul.f32 %v1071_v27, %v316_v28 }
 0x184   :  { %v301_v6 = vpop.permute.xlu0 %300 }
 0x185   :  { %v307_v12 = vmul.f32 %v1069_v5, %v301_v6  ;;  %v1068_v6 = vld [vmem:[%s1537_s3 + $0x18] sm:$0xff] }
 0x186   :  { %v251_v54 = vpop.permute.xlu2 %250 }
 0x187   :  { %v309_v29 = vadd.f32 %v307_v12, %v294_v21 }
 0x189   :  { %v324_v37 = vadd.f32 %v322_v34, %v309_v29 }
 0x18c   :  { %v288_v51 = vpop.permute.xlu1 %287 }
 0x18d   :  { %v291_v57 = vmul.f32 %v288_v51, %v279_v55 }
 0x18f   :  { %v295_v63 = vadd.f32 %v293_v59, %v291_v57  ;;  %v258_v57 = vpop.permute.xlu0 %257 }
 0x195   :  { %v305_v58 = vpop.permute.xlu1 %304 }
 0x196   :  { %v308_v60 = vmul.f32 %v1070_v56, %v305_v58  ;;  %v1066_v56 = vld [vmem:[%s1537_s3 + $0x8] sm:$0xff]  ;;  %v247_v58 = vld [vmem:[%s1537_s3] sm:$0xff] }
 0x197   :  { %v253_v0 = vmul.f32 %v251_v54, %v247_v58  ;;  %v1187_v54 = vmov 5  }
 0x198   :  { %v310_v4 = vadd.f32 %v308_v60, %v295_v63  ;;  %v1067_v60 = vld [vmem:[%s1537_s3 + $0x10] sm:$0xff]  ;;  %v260_v63 = vmul.f32 %v1066_v56, %v258_v57  ;;  %v1189_v56 = vmov 6  }
 0x19a   :  { %v325_v14 = vadd.f32 %v323_v9, %v310_v4  ;;  %v261_v7 = vadd.f32 %v260_v63, %v253_v0  ;;  %v1091_v0 = vld [vmem:[%s1542_s8 + $0x10] sm:$0xff] }
 0x19e   :  { %v335_v11 = vpop.permute.xlu1 %334 }
 0x19f   :  { %v338_v17 = vmul.f32 %v1074_v2, %v335_v11  ;;  %v274_v2 = vpop.permute.xlu2 %273 }
 0x1a0   :  { %v276_v12 = vmul.f32 %v1068_v6, %v274_v2  ;;  %v1093_v6 = vld [vmem:[%s1542_s8 + $0x20] sm:$0xff] }
 0x1a1   :  { %v340_v24 = vadd.f32 %v338_v17, %v325_v14 }
 0x1a3   :  { %v348_v30 = vsel %vm346_vm5, %v340_v24, 0 }
 0x1a4   :  { %v364_v32 = vand.u32 4294901760, %v348_v30 }
 0x1a6   :  { %v392_v35 = vsub.f32 %v348_v30, %v364_v32  ;;  %365 = vmatpush.msrb.mxu2 %v364_v32  ;;  %501 = vmatpush.msra.mxu1 %v364_v32  ;;  %v331_v36 = vpop.permute.xlu1 %330 }
 0x1a7   :  { %v337_v38 = vmul.f32 %v1073_v33, %v331_v36 }
 0x1a8   :  { %v393_v40 = vand.u32 4294901760, %v392_v35 }
 0x1a9   :  { %v339_v41 = vadd.f32 %v337_v38, %v324_v37 }
 0x1aa   :  { %476 = vmatpush.msra.mxu0 %v393_v40  ;;  %v394_v42 = vsub.f32 %v392_v35, %v393_v40 }
 0x1ab   :  { %v366_v43 = vand.u32 4294901760, %v339_v41 }
 0x1ac   :  { %v395_v45 = vand.u32 4294901760, %v394_v42 }
 0x1ad   :  { %367 = vmatpush.msrb.mxu2 %v366_v43  ;;  %503 = vmatpush.msra.mxu1 %v366_v43  ;;  %v398_v46 = vsub.f32 %v339_v41, %v366_v43 }
 0x1ae   :  { %396 = vmatpush.msrb.mxu3 %v395_v45  ;;  %373 = vmatmul.f32.vlgmr.msrb.gmra.mxu2 %v1374_v44 }
 0x1af   :  { %424 = vmatpush.msra.mxu2 %v392_v35  ;;  %v399_v47 = vand.u32 4294901760, %v398_v46  ;;  %1077 = vmatmul.msk.f32.vlgmr.msra.gmra.mxu1 %vm342_vm4, %v1341_v62  ;;  %v266_v61 = vpop.permute.xlu1 %265 }
 0x1b0   :  { %v268_v5 = vmul.f32 %v1067_v60, %v266_v61  ;;  %v751_v61 = vld [vmem:[%s1542_s8] sm:$0xff] }
 0x1b1   :  { %427 = vmatpush.msra.mxu2 %v398_v46  ;;  %480 = vmatpush.msra.mxu0 %v399_v47  ;;  %v400_v48 = vsub.f32 %v398_v46, %v399_v47 }
 0x1b2   :  { %1076 = vmatmul.msk.f32.vlgmr.msra.gmra.mxu0 %vm342_vm4, %v1341_v62  ;;  %v269_v11 = vadd.f32 %v268_v5, %v261_v7  ;;  %v765_v5 = vld [vmem:[%s1543_s9] sm:$0xff]  ;;  %v1092_v7 = vld [vmem:[%s1542_s8 + $0x18] sm:$0xf] }
 0x1b3   :  { %v401_v51 = vand.u32 4294901760, %v400_v48 }
 0x1b4   :  { %v277_v24 = vadd.f32 %v276_v12, %v269_v11 }
 0x1b5   :  { %402 = vmatpush.msrb.mxu3 %v401_v51 }
 0x1b6   :  { %1075 = vmatmul.msk.f32.vlgmr.msrb.gmra.mxu3 %vm342_vm4, %v1341_v62  ;;  %430 = vmatmul.f32.vlgmr.msra.gmra.mxu2 %v1360_v18 }
 0x1b7   :  { %449 = vmatpush.msra.mxu3 %v364_v32 }
 0x1b9   :  { %451 = vmatpush.msra.mxu3 %v366_v43 }
 0x1be   :  { %455 = vmatmul.f32.vlgmr.msra.gmra.mxu3 %v1367_v31 }
 0x22c   :  { %v506_v17 = vpop.f32.mrf.mxu1 }
 0x22f   :  { %v483_v10 = vpop.f32.mrf.mxu0 }
 0x231   :  { %v374_v52 = vpop.f32.mrf.mxu2 }
 0x232   :  { %v375_v55 = vadd.f32 %v374_v52, %v341_v53 }
 0x239   :  { %v405_v59 = vpop.f32.mrf.mxu3  ;;  %v431_v4 = vpop.f32.mrf.mxu2 }
 0x23a   :  { %v406_v3 = vadd.f32 %v405_v59, %v375_v55  ;;  %v1188_v55 = vmov 7  }
 0x23c   :  { %v432_v8 = vadd.f32 %v431_v4, %v406_v3  ;;  %v752_v4 = vld [vmem:[%s1542_s8 + $0x8] sm:$0xf] }
 0x241   :  { %v456_v9 = vpop.f32.mrf.mxu3 }
 0x242   :  { %v457_v14 = vadd.f32 %v456_v9, %v432_v8  ;;  %v1095_v8 = vld [vmem:[%s1542_s8 + $0x30] sm:$0xff] }
 0x244   :  { %v484_v21 = vadd.f32 %v483_v10, %v457_v14  ;;  %v766_v14 = vld [vmem:[%s1543_s9 + $0x8] sm:$0xf] }
 0x246   :  { %v507_v27 = vadd.f32 %v506_v17, %v484_v21 }
 0x248   :  { %v509_v28 = vadd.f32 %v507_v27, %v277_v24 }
 0x24a   :  { %1153 = vtanh.f32 %v509_v28  ;;  %v1094_v28 = vld [vmem:[%s1542_s8 + $0x28] sm:$0xf] }
 0x250   :  { %v1400_v29 = vpop.eup %1153 }
 0x251   :  { %v526_v30 = vand.u32 4294901760, %v1400_v29 }
 0x253   :  { %527 = vmatpush.msrb.mxu2 %v526_v30  ;;  %620 = vmatpush.msrb.mxu1 %v526_v30  ;;  %v561_v32 = vsub.f32 %v1400_v29, %v526_v30 }
 0x254   :  { %533 = vmatmul.f32.vlgmr.msrb.gmra.mxu2 %v1288_v20  ;;  %624 = vmatmul.f32.vlgmr.msrb.gmra.mxu1 %v1280_v16 }
 0x255   :  { %592 = vmatpush.msrb.mxu0 %v561_v32  ;;  %v562_v33 = vand.u32 4294901760, %v561_v32 }
 0x256   :  { %595 = vmatmul.f32.vlgmr.msrb.gmra.mxu0 %v1276_v15  ;;  %v1186_v15 = vmov 4  }
 0x257   :  { %652 = vmatpush.msra.mxu2 %v562_v33  ;;  %v563_v34 = vsub.f32 %v561_v32, %v562_v33  ;;  %1131 = vset.pattern.permute.xlu0 %v1186_v15  ;;  %v1097_v33 = vld [vmem:[%s1542_s8 + $0x40] sm:$0xff] }
 0x259   :  { %v564_v35 = vand.u32 4294901760, %v563_v34 }
 0x25b   :  { %565 = vmatpush.msrb.mxu3 %v564_v35 }
 0x25c   :  { %541 = vmatmul.f32.gmra.mxu2 %v1304_v25  ;;  %1078 = vmatmul.msk.f32.vlgmr.msrb.gmra.mxu3 %vm63_vm0, %v1270_v13 }
 0x25d   :  { %630 = vmatmul.f32.gmra.mxu1 %v1299_v23  ;;  %678 = vmatpush.msra.mxu3 %v526_v30 }
 0x25e   :  { %600 = vmatmul.f32.gmra.mxu0 %v1295_v22 }
 0x264   :  { %1079 = vmatmul.msk.f32.gmra.mxu3 %vm63_vm0, %v1286_v19  ;;  %1080 = vmatmul.msk.f32.vlgmr.msra.gmra.mxu2 %vm63_vm0, %v1270_v13 }
 0x26c   :  { %1081 = vmatmul.msk.f32.gmra.mxu2 %vm63_vm0, %v1286_v19  ;;  %1082 = vmatmul.msk.f32.vlgmr.msra.gmra.mxu3 %vm63_vm0, %v1270_v13 }
 0x274   :  { %1083 = vmatmul.msk.f32.gmra.mxu3 %vm63_vm0, %v1286_v19 }
 0x2d1   :  { %v625_v38 = vpop.f32.mrf.mxu1 }
 0x2d3   :  { %v596_v25 = vpop.f32.mrf.mxu0 }
 0x2d7   :  { %v534_v16 = vpop.f32.mrf.mxu2 }
 0x2da   :  { %v631_v19 = vpop.f32.mrf.mxu1 }
 0x2db   :  { %v601_v43 = vpop.f32.mrf.mxu0 }
 0x2df   :  { %v542_v20 = vpop.f32.mrf.mxu2  ;;  %v568_v22 = vpop.f32.mrf.mxu3 }
 0x2e0   :  { %v569_v23 = vadd.f32 %v568_v22, %v534_v16  ;;  %v1096_v16 = vld [vmem:[%s1542_s8 + $0x38] sm:$0xf] }
 0x2e2   :  { %v597_v37 = vadd.f32 %v596_v25, %v569_v23  ;;  %v1099_v23 = vld [vmem:[%s1542_s8 + $0x50] sm:$0xff] }
 0x2e4   :  { %v626_v41 = vadd.f32 %v625_v38, %v597_v37  ;;  %v1098_v38 = vld [vmem:[%s1542_s8 + $0x48] sm:$0xf] }
 0x2e7   :  { %v572_v36 = vpop.f32.mrf.mxu3  ;;  %v655_v39 = vpop.f32.mrf.mxu2 }
 0x2e8   :  { %v573_v40 = vadd.f32 %v572_v36, %v542_v20  ;;  %v656_v42 = vadd.f32 %v655_v39, %v626_v41  ;;  %v1101_v36 = vld [vmem:[%s1542_s8 + $0x60] sm:$0xff]  ;;  %v1103_v41 = vld [vmem:[%s1542_s8 + $0x70] sm:$0xff] }
 0x2ea   :  { %v602_v13 = vadd.f32 %v601_v43, %v573_v40 }
 0x2ec   :  { %v632_v48 = vadd.f32 %v631_v19, %v602_v13  ;;  %v1100_v19 = vld [vmem:[%s1542_s8 + $0x58] sm:$0xf] }
 0x2ef   :  { %v681_v45 = vpop.f32.mrf.mxu3  ;;  %v659_v47 = vpop.f32.mrf.mxu2 }
 0x2f0   :  { %v682_v46 = vadd.f32 %v681_v45, %v656_v42  ;;  %v660_v51 = vadd.f32 %v659_v47, %v632_v48 }
 0x2f2   :  { %818 = vperm.xlu0 %1131, %v682_v46   ;;  %788 = vperm.xlu1 %1126, %v682_v46  }
 0x2f3   :  { %755 = vperm.xlu2 %1128, %v682_v46  }
 0x2f7   :  { %v685_v52 = vpop.f32.mrf.mxu3 }
 0x2f8   :  { %v686_v53 = vadd.f32 %v685_v52, %v660_v51 }
 0x2fa   :  { %1133 = vset.pattern.permute.xlu0 %v1181_v1  ;;  %1130 = vset.pattern.permute.xlu1 %v1185_v50 }
 0x2fb   :  { %1129 = vset.pattern.permute.xlu2 %v1183_v26  ;;  %803 = vperm.xlu1 %1130, %v682_v46  }
 0x2fc   :  { %773 = vperm.xlu2 %1129, %v682_v46   ;;  %760 = vperm.xlu0 %1133, %v686_v53  }
 0x303   :  { %1134 = vset.pattern.permute.xlu1 %v1183_v26 }
 0x304   :  { %1132 = vset.pattern.permute.xlu2 %v1187_v54  ;;  %1136 = vset.pattern.permute.xlu0 %v1185_v50 }
 0x305   :  { %833 = vperm.xlu2 %1132, %v682_v46   ;;  %777 = vperm.xlu1 %1134, %v686_v53  }
 0x306   :  { %807 = vperm.xlu0 %1136, %v686_v53  }
 0x30d   :  { %1137 = vset.pattern.permute.xlu2 %v1186_v15  ;;  %1135 = vset.pattern.permute.xlu1 %v1184_v49 }
 0x30e   :  { %1142 = vset.pattern.permute.xlu0 %v1188_v55  ;;  %822 = vperm.xlu2 %1137, %v686_v53  }
 0x30f   :  { %792 = vperm.xlu1 %1135, %v686_v53   ;;  %863 = vperm.xlu0 %1142, %v682_v46  }
 0x316   :  { %1138 = vset.pattern.permute.xlu2 %v1187_v54 }
 0x317   :  { %1139 = vset.pattern.permute.xlu1 %v1189_v56  ;;  %1147 = vset.pattern.permute.xlu0 %v1186_v15 }
 0x318   :  { %837 = vperm.xlu2 %1138, %v686_v53   ;;  %852 = vperm.xlu1 %1139, %v686_v53  }
 0x319   :  { %722 = vperm.xlu0 %1147, %v1400_v29  }
 0x320   :  { %1141 = vset.pattern.permute.xlu2 %v1189_v56  ;;  %1140 = vset.pattern.permute.xlu1 %v1188_v55 }
 0x321   :  { %848 = vperm.xlu2 %1141, %v682_v46   ;;  %867 = vperm.xlu1 %1140, %v686_v53   ;;  %v1102_v53 = vld [vmem:[%s1542_s8 + $0x68] sm:$0xf] }
 0x322   :  { %1151 = vset.pattern.permute.xlu0 %v1188_v55 }
 0x329   :  { %1144 = vset.pattern.permute.xlu2 %v1183_v26  ;;  %1143 = vset.pattern.permute.xlu1 %v1181_v1 }
 0x32a   :  { %698 = vperm.xlu2 %1144, %v1400_v29   ;;  %691 = vperm.xlu1 %1143, %v1400_v29  }
 0x332   :  { %1146 = vset.pattern.permute.xlu2 %v1185_v50  ;;  %1145 = vset.pattern.permute.xlu1 %v1184_v49 }
 0x333   :  { %714 = vperm.xlu2 %1146, %v1400_v29   ;;  %706 = vperm.xlu1 %1145, %v1400_v29  }
 0x33b   :  { %1149 = vset.pattern.permute.xlu2 %v1189_v56  ;;  %1148 = vset.pattern.permute.xlu1 %v1187_v54 }
 0x33c   :  { %738 = vperm.xlu2 %1149, %v1400_v29   ;;  %730 = vperm.xlu1 %1148, %v1400_v29  }
 0x344   :  { %1150 = vset.pattern.permute.xlu1 %v1188_v55 }
 0x345   :  { %746 = vperm.xlu1 %1150, %v1400_v29  }
 0x34d   :  { %v756_v1 = vpop.permute.xlu2 %755 }
 0x34e   :  { %v763_v3 = vmul.f32 %v756_v1, %v751_v61 }
 0x350   :  { %v767_v11 = vadd.f32 %v765_v5, %v763_v3 }
 0x356   :  { %v774_v26 = vpop.permute.xlu2 %773 }
 0x357   :  { %v780_v2 = vmul.f32 %v1091_v0, %v774_v26  ;;  %v1104_v26 = vld [vmem:[%s1542_s8 + $0x78] sm:$0xf] }
 0x359   :  { %v782_v24 = vadd.f32 %v780_v2, %v767_v11  ;;  %v1084_v11 = vld [vmem:[%s1541_s7 + $0x8] sm:$0xff] }
 0x35f   :  { %v834_v58 = vpop.permute.xlu2 %833 }
 0x360   :  { %v840_v43 = vmul.f32 %v1099_v23, %v834_v58 }
 0x364   :  { %v789_v57 = vpop.permute.xlu1 %788  ;;  %v819_v50 = vpop.permute.xlu0 %818 }
 0x365   :  { %v795_v12 = vmul.f32 %v1093_v6, %v789_v57  ;;  %v825_v22 = vmul.f32 %v1097_v33, %v819_v50  ;;  %v1087_v33 = vld [vmem:[%s1541_s7 + $0x20] sm:$0xff] }
 0x367   :  { %v797_v30 = vadd.f32 %v795_v12, %v782_v24 }
 0x368   :  { %v823_v49 = vpop.permute.xlu2 %822 }
 0x369   :  { %v826_v13 = vmul.f32 %v1098_v38, %v823_v49 }
 0x36d   :  { %v804_v59 = vpop.permute.xlu1 %803 }
 0x36e   :  { %v761_v60 = vpop.permute.xlu0 %760  ;;  %v810_v27 = vmul.f32 %v1095_v8, %v804_v59 }
 0x36f   :  { %v764_v9 = vmul.f32 %v761_v60, %v752_v4 }
 0x370   :  { %v812_v15 = vadd.f32 %v810_v27, %v797_v30 }
 0x371   :  { %v768_v29 = vadd.f32 %v766_v14, %v764_v9 }
 0x372   :  { %v838_v10 = vpop.permute.xlu2 %837  ;;  %v827_v39 = vadd.f32 %v825_v22, %v812_v15 }
 0x373   :  { %v841_v54 = vmul.f32 %v1100_v19, %v838_v10  ;;  %v688_v10 = vld [vmem:[%s1541_s7] sm:$0xff] }
 0x374   :  { %v842_v47 = vadd.f32 %v840_v43, %v827_v39  ;;  %v1090_v39 = vld [vmem:[%s1541_s7 + $0x38] sm:$0xff] }
 0x377   :  { %v778_v63 = vpop.permute.xlu1 %777 }
 0x378   :  { %v781_v17 = vmul.f32 %v1092_v7, %v778_v63  ;;  %v808_v21 = vpop.permute.xlu0 %807 }
 0x379   :  { %v811_v25 = vmul.f32 %v1096_v16, %v808_v21  ;;  %v1086_v21 = vld [vmem:[%s1541_s7 + $0x18] sm:$0xff] }
 0x37a   :  { %v783_v34 = vadd.f32 %v781_v17, %v768_v29 }
 0x37b   :  { %v849_v37 = vpop.permute.xlu2 %848 }
 0x37c   :  { %v855_v45 = vmul.f32 %v1101_v36, %v849_v37  ;;  %v1089_v37 = vld [vmem:[%s1541_s7 + $0x30] sm:$0xff] }
 0x37e   :  { %v857_v52 = vadd.f32 %v855_v45, %v842_v47 }
 0x381   :  { %v793_v32 = vpop.permute.xlu1 %792  ;;  %v864_v42 = vpop.permute.xlu0 %863 }
 0x382   :  { %v796_v35 = vmul.f32 %v1094_v28, %v793_v32  ;;  %v870_v48 = vmul.f32 %v1103_v41, %v864_v42  ;;  %v874_v28 = vld [vmem:[%s1544_s10] sm:$0xff] }
 0x384   :  { %v798_v20 = vadd.f32 %v796_v35, %v783_v34  ;;  %v872_v55 = vadd.f32 %v870_v48, %v857_v52  ;;  %v699_v8 = vpop.permute.xlu2 %698  ;;  %v1088_v35 = vld [vmem:[%s1541_s7 + $0x28] sm:$0xff] }
 0x386   :  { %v813_v40 = vadd.f32 %v811_v25, %v798_v20  ;;  %v894_v57 = vand.u32 4294901760, %v872_v55 }
 0x388   :  { %v828_v51 = vadd.f32 %v826_v13, %v813_v40  ;;  %v926_v60 = vsub.f32 %v872_v55, %v894_v57 }
 0x38a   :  { %v853_v46 = vpop.permute.xlu1 %852  ;;  %v843_v56 = vadd.f32 %v841_v54, %v828_v51  ;;  %v927_v3 = vand.u32 4294901760, %v926_v60 }
 0x38b   :  { %v856_v1 = vmul.f32 %v1102_v53, %v853_v46  ;;  %v723_v34 = vpop.permute.xlu0 %722 }
 0x38c   :  { %v928_v6 = vsub.f32 %v926_v60, %v927_v3  ;;  %v725_v20 = vmul.f32 %v1087_v33, %v723_v34 }
 0x38d   :  { %v858_v50 = vadd.f32 %v856_v1, %v843_v56  ;;  %v715_v24 = vpop.permute.xlu2 %714 }
 0x38e   :  { %v929_v7 = vand.u32 4294901760, %v928_v6  ;;  %v717_v30 = vmul.f32 %v1086_v21, %v715_v24 }
 0x393   :  { %v868_v58 = vpop.permute.xlu1 %867 }
 0x394   :  { %v871_v59 = vmul.f32 %v1104_v26, %v868_v58 }
 0x396   :  { %v873_v49 = vadd.f32 %v871_v59, %v858_v50  ;;  %v739_v38 = vpop.permute.xlu2 %738 }
 0x397   :  { %v741_v13 = vmul.f32 %v1089_v37, %v739_v38 }
 0x398   :  { %v876_v61 = vsel %vm346_vm5, %v873_v49, 0 }
 0x399   :  { %v892_v63 = vand.u32 4294901760, %v876_v61 }
 0x39b   :  { %v920_v0 = vsub.f32 %v876_v61, %v892_v63  ;;  %893 = vmatpush.msra.mxu0 %v892_v63  ;;  %1029 = vmatpush.msrb.mxu3 %v892_v63 }
 0x39d   :  { %895 = vmatpush.msra.mxu0 %v894_v57  ;;  %1031 = vmatpush.msrb.mxu3 %v894_v57  ;;  %v921_v4 = vand.u32 4294901760, %v920_v0 }
 0x39e   :  { %1107 = vmatmul.msk.f32.vlgmr.msrb.gmra.mxu3 %vm342_vm4, %v1341_v62  ;;  %901 = vmatmul.f32.vlgmr.msra.gmra.mxu0 %v1374_v44  ;;  %v692_v44 = vpop.permute.xlu1 %691 }
 0x39f   :  { %952 = vmatpush.msrb.mxu0 %v920_v0  ;;  %1004 = vmatpush.msrb.mxu2 %v921_v4  ;;  %v922_v5 = vsub.f32 %v920_v0, %v921_v4  ;;  %v694_v12 = vmul.f32 %v692_v44, %v688_v10 }
 0x3a1   :  { %955 = vmatpush.msrb.mxu0 %v926_v60  ;;  %1008 = vmatpush.msrb.mxu2 %v927_v3  ;;  %v923_v2 = vand.u32 4294901760, %v922_v5 }
 0x3a2   :  { %1106 = vmatmul.msk.f32.vlgmr.msrb.gmra.mxu2 %vm342_vm4, %v1341_v62 }
 0x3a3   :  { %924 = vmatpush.msra.mxu1 %v923_v2 }
 0x3a5   :  { %930 = vmatpush.msra.mxu1 %v929_v7 }
 0x3a6   :  { %1105 = vmatmul.msk.f32.vlgmr.msra.gmra.mxu1 %vm342_vm4, %v1341_v62  ;;  %958 = vmatmul.f32.vlgmr.msrb.gmra.mxu0 %v1360_v18  ;;  %v707_v9 = vpop.permute.xlu1 %706  ;;  %v1085_v62 = vld [vmem:[%s1541_s7 + $0x10] sm:$0xff]  ;;  %v701_v18 = vmul.f32 %v1084_v11, %v699_v8 }
 0x3a7   :  { %977 = vmatpush.msrb.mxu1 %v892_v63  ;;  %v709_v14 = vmul.f32 %v1085_v62, %v707_v9 }
 0x3a9   :  { %979 = vmatpush.msrb.mxu1 %v894_v57 }
 0x3ae   :  { %983 = vmatmul.f32.vlgmr.msrb.gmra.mxu1 %v1367_v31  ;;  %v702_v31 = vadd.f32 %v701_v18, %v694_v12  ;;  %v731_v27 = vpop.permute.xlu1 %730 }
 0x3af   :  { %v733_v22 = vmul.f32 %v1088_v35, %v731_v27 }
 0x3b0   :  { %v710_v29 = vadd.f32 %v709_v14, %v702_v31 }
 0x3b2   :  { %v718_v16 = vadd.f32 %v717_v30, %v710_v29 }
 0x3b4   :  { %v726_v36 = vadd.f32 %v725_v20, %v718_v16 }
 0x3b6   :  { %v734_v41 = vadd.f32 %v733_v22, %v726_v36 }
 0x3b7   :  { %v747_v40 = vpop.permute.xlu1 %746 }
 0x3b8   :  { %v749_v46 = vmul.f32 %v1090_v39, %v747_v40  ;;  %v742_v48 = vadd.f32 %v741_v13, %v734_v41 }
 0x3ba   :  { %v750_v52 = vadd.f32 %v749_v46, %v742_v48 }
 0x41b   :  { %v902_v17 = vpop.f32.mrf.mxu0 }
 0x41c   :  { %v903_v32 = vadd.f32 %v902_v17, %v874_v28 }
 0x421   :  { %v1034_v47 = vpop.f32.mrf.mxu3 }
 0x423   :  { %v933_v15 = vpop.f32.mrf.mxu1  ;;  %v959_v25 = vpop.f32.mrf.mxu0 }
 0x424   :  { %v934_v23 = vadd.f32 %v933_v15, %v903_v32 }
 0x425   :  { %v1011_v45 = vpop.f32.mrf.mxu2 }
 0x426   :  { %v960_v42 = vadd.f32 %v959_v25, %v934_v23 }
 0x42b   :  { %v984_v43 = vpop.f32.mrf.mxu1 }
 0x42c   :  { %v985_v19 = vadd.f32 %v984_v43, %v960_v42 }
 0x42e   :  { %v1012_v51 = vadd.f32 %v1011_v45, %v985_v19 }
 0x430   :  { %v1035_v53 = vadd.f32 %v1034_v47, %v1012_v51 }
 0x432   :  { %v1037_v54 = vadd.f32 %v1035_v53, %v750_v52 }
 0x434   :  { %1040 = vst.msk [vmem:[#allocation2] sm:$0xff] %vm1039_vm6, %v1037_v54 }
 0x435   :  { %1051 = dma.vmem_to_hbm [thread:$0]  %s1047_s27, 128, %s1049_s1, [#allocation3]  }
 0x436   :  { %1179 = dma.done.wait [#allocation3], 128  }
 0x437   :  { %1180 = vsyncadd [#allocation3], 4294967168 }
 0x438   :  { %1056 = vsyncpa [#allocation3], 1 }

</bundles_post_ra>
